<compile_context>
chip_gen: v7x
topology: tpu7x:2x2x1
jax: 0.10.0
libtpu: 0.0.40
codegen_flags: <defaults>
</compile_context>

<pallas_src>
import math

import jax
import jax.numpy as jnp
from jax import lax
from jax.experimental import pallas as pl
from jax.experimental.pallas import tpu as pltpu


def _round_up(n, m):
    return ((n + m - 1) // m) * m


def policy_kernel(x_ref, w1_ref, b1_ref, w2_ref, b2_ref, w3_ref, b3_ref, o_ref):
    x = x_ref[...]                                               # (TB, 7)

    # fc1 + ReLU  (batch-major; f32 accumulation on the MXU)
    h1 = jnp.dot(x, w1_ref[...], preferred_element_type=jnp.float32)
    h1 = jnp.maximum(h1 + b1_ref[...], 0.0)                      # (TB, 64)

    # fc2 + ReLU
    h2 = jnp.dot(h1, w2_ref[...], preferred_element_type=jnp.float32)
    h2 = jnp.maximum(h2 + b2_ref[...], 0.0)                      # (TB, 64)

    # fc3 + tanh, computed NT: (1, 64) contracted with (TB, 64) -> (1, TB).
    # Result has batch on the lane axis -> lane-dense output stores.
    h3 = lax.dot_general(
        w3_ref[...], h2,
        dimension_numbers=(((1,), (1,)), ((), ())),
        preferred_element_type=jnp.float32)                      # (1, TB)
    o_ref[...] = jnp.tanh(h3 + b3_ref[...]).astype(o_ref.dtype)


def policy_forward(state, params, *, block_batch=8192):
    """state: (B, 7) float32 -> action: (B, 1) float32."""
    w1, b1, w2, b2, w3, b3 = params
    B = state.shape[0]

    # Batch tile. Small batches collapse to a single grid step (tile == full
    # padded batch); large batches use block_batch (must be a multiple of 128
    # so the (1, TB) output block is lane-aligned).
    if B <= block_batch:
        tb = _round_up(B, 8)
    else:
        assert block_batch % 128 == 0, "block_batch must be a multiple of 128"
        tb = block_batch
    b_pad = _round_up(B, tb)
    if b_pad != B:
        state = jnp.pad(state, ((0, b_pad - B), (0, 0)))
    grid = (b_pad // tb,)

    # Weights/biases: same block index every step -> resident in VMEM.
    def resident(arr):
        return pl.BlockSpec(arr.shape, lambda i: (0, 0))

    # TODO(synk): for v5e (lowest HBM BW) the (B, 7) input could be cast to
    # bfloat16 at this boundary (keep f32 accumulation); kept f32 here to match
    # the PyTorch reference numerics exactly.

    flops = 2 * b_pad * (7 * 64 + 64 * 64 + 64 * 1)
    param_bytes = sum(a.size * 4 for a in (w1, b1, w2, b2, w3, b3))
    bytes_accessed = b_pad * (7 + 1) * 4 + param_bytes

    out = pl.pallas_call(
        policy_kernel,
        out_shape=jax.ShapeDtypeStruct((1, b_pad), jnp.float32),
        grid=grid,
        in_specs=[
            pl.BlockSpec((tb, 7), lambda i: (i, 0)),   # batch-tiled input
            resident(w1), resident(b1),
            resident(w2), resident(b2),
            resident(w3), resident(b3),
        ],
        out_specs=pl.BlockSpec((1, tb), lambda i: (0, i)),  # lane-dense output
        compiler_params=pltpu.CompilerParams(
            dimension_semantics=("parallel",)),
        cost_estimate=pl.CostEstimate(
            flops=flops, transcendentals=b_pad, bytes_accessed=bytes_accessed),
    )(state, w1, b1, w2, b2, w3, b3)

    # (1, b_pad) -> (b_pad, 1) is a free row-major reshape; drop padded rows.
    return out.reshape(b_pad, 1)[:B]


def init_params(key):
    """Deterministic init mimicking torch nn.Linear (uniform +/- 1/sqrt(fan_in)).

    w1, w2 stored as (in, out); w3 stored as torch-style (out, in) = (1, 64).
    """
    def uniform(k, shape, bound):
        return jax.random.uniform(k, shape, jnp.float32, -bound, bound)

    k1, k2, k3, k4, k5, k6 = jax.random.split(key, 6)
    bd1 = 1.0 / math.sqrt(7)
    w1 = uniform(k1, (7, 64), bd1)
    b1 = uniform(k2, (1, 64), bd1)
    bd2 = 1.0 / math.sqrt(64)
    w2 = uniform(k3, (64, 64), bd2)
    b2 = uniform(k4, (1, 64), bd2)
    bd3 = 1.0 / math.sqrt(64)
    w3 = uniform(k5, (1, 64), bd3)   # (out, in)
    b3 = uniform(k6, (1, 1), bd3)
    return (w1, b1, w2, b2, w3, b3)


def reference_forward(state, params):
    w1, b1, w2, b2, w3, b3 = params
    h = jnp.maximum(state @ w1 + b1, 0.0)
    h = jnp.maximum(h @ w2 + b2, 0.0)
    return jnp.tanh(h @ w3.T + b3)


if __name__ == "__main__":
    key = jax.random.PRNGKey(0)
    k_params, k_state = jax.random.split(key)
    params = init_params(k_params)

    # Small pendulum-style batch of 7-dim states (single-tile path).
    state = jax.random.normal(k_state, (8, 7), jnp.float32)
    action = jax.block_until_ready(policy_forward(state, params))
    ref = reference_forward(state, params)
    assert action.shape == (8, 1)
    assert jnp.allclose(action, ref, atol=1e-5, rtol=1e-5), "mismatch (B=8)"

    # Ragged batch with a small tile to exercise the grid, resident weights,
    # padding, and lane-dense tiled output path.
    state2 = jax.random.normal(jax.random.PRNGKey(1), (300, 7), jnp.float32)
    action2 = jax.block_until_ready(
        policy_forward(state2, params, block_batch=128))
    ref2 = reference_forward(state2, params)
    assert action2.shape == (300, 1)
    assert jnp.allclose(action2, ref2, atol=1e-5, rtol=1e-5), "mismatch (B=300)"

    print("KERNEL_OK")
</pallas_src>

<mosaic_0001>
module attributes {stable_mosaic.version = 11 : i64} {
  func.func @policy_kernel(%arg0: i32, %arg1: memref<8x7xf32, #tpu.memory_space<vmem>>, %arg2: memref<7x64xf32, #tpu.memory_space<vmem>>, %arg3: memref<1x64xf32, #tpu.memory_space<vmem>>, %arg4: memref<64x64xf32, #tpu.memory_space<vmem>>, %arg5: memref<1x64xf32, #tpu.memory_space<vmem>>, %arg6: memref<1x64xf32, #tpu.memory_space<vmem>>, %arg7: memref<1x1xf32, #tpu.memory_space<vmem>>, %arg8: memref<1x8xf32, #tpu.memory_space<vmem>>) attributes {dimension_semantics = [#tpu.dimension_semantics<parallel>], iteration_bounds = array<i64: 1>, scalar_prefetch = 0 : i64, scratch_operands = 0 : i64, tpu.core_type = #tpu.core_type<tc>, window_params = [{transform_indices = @transform_0, window_bounds = array<i64: 8, 7>}, {pipeline_mode = #tpu.pipeline_mode<synchronous>, transform_indices = @transform_1, window_bounds = array<i64: 7, 64>}, {pipeline_mode = #tpu.pipeline_mode<synchronous>, transform_indices = @transform_2, window_bounds = array<i64: 1, 64>}, {pipeline_mode = #tpu.pipeline_mode<synchronous>, transform_indices = @transform_3, window_bounds = array<i64: 64, 64>}, {pipeline_mode = #tpu.pipeline_mode<synchronous>, transform_indices = @transform_4, window_bounds = array<i64: 1, 64>}, {pipeline_mode = #tpu.pipeline_mode<synchronous>, transform_indices = @transform_5, window_bounds = array<i64: 1, 64>}, {pipeline_mode = #tpu.pipeline_mode<synchronous>, transform_indices = @transform_6, window_bounds = array<i64: 1, 1>}, {transform_indices = @transform_7, window_bounds = array<i64: 1, 8>}]} {
    %c0 = arith.constant 0 : index
    %c0_0 = arith.constant 0 : index
    %0 = vector.load %arg1[%c0, %c0_0] : memref<8x7xf32, #tpu.memory_space<vmem>>, vector<8x7xf32>
    %c0_1 = arith.constant 0 : index
    %c0_2 = arith.constant 0 : index
    %1 = vector.load %arg2[%c0_1, %c0_2] : memref<7x64xf32, #tpu.memory_space<vmem>>, vector<7x64xf32>
    %cst = arith.constant dense<0.000000e+00> : vector<8x64xf32>
    %2 = tpu.matmul %0, %1, %cst {dimension_numbers = #tpu.dot_dimension_numbers<[1], [0], [0], [1], [0, 0, 1, 1], [], []>} : vector<8x7xf32>, vector<7x64xf32>, vector<8x64xf32> -> vector<8x64xf32>
    %c0_3 = arith.constant 0 : index
    %c0_4 = arith.constant 0 : index
    %3 = vector.load %arg3[%c0_3, %c0_4] : memref<1x64xf32, #tpu.memory_space<vmem>>, vector<1x64xf32>
    %4 = vector.broadcast %3 : vector<1x64xf32> to vector<8x64xf32>
    %5 = arith.addf %2, %4 : vector<8x64xf32>
    %cst_5 = arith.constant 0.000000e+00 : f32
    %6 = vector.broadcast %cst_5 : f32 to vector<8x64xf32>
    %7 = arith.maximumf %5, %6 : vector<8x64xf32>
    %c0_6 = arith.constant 0 : index
    %c0_7 = arith.constant 0 : index
    %8 = vector.load %arg4[%c0_6, %c0_7] : memref<64x64xf32, #tpu.memory_space<vmem>>, vector<64x64xf32>
    %cst_8 = arith.constant dense<0.000000e+00> : vector<8x64xf32>
    %9 = tpu.matmul %7, %8, %cst_8 {dimension_numbers = #tpu.dot_dimension_numbers<[1], [0], [0], [1], [0, 0, 1, 1], [], []>} : vector<8x64xf32>, vector<64x64xf32>, vector<8x64xf32> -> vector<8x64xf32>
    %c0_9 = arith.constant 0 : index
    %c0_10 = arith.constant 0 : index
    %10 = vector.load %arg5[%c0_9, %c0_10] : memref<1x64xf32, #tpu.memory_space<vmem>>, vector<1x64xf32>
    %11 = vector.broadcast %10 : vector<1x64xf32> to vector<8x64xf32>
    %12 = arith.addf %9, %11 : vector<8x64xf32>
    %cst_11 = arith.constant 0.000000e+00 : f32
    %13 = vector.broadcast %cst_11 : f32 to vector<8x64xf32>
    %14 = arith.maximumf %12, %13 : vector<8x64xf32>
    %c0_12 = arith.constant 0 : index
    %c0_13 = arith.constant 0 : index
    %15 = vector.load %arg6[%c0_12, %c0_13] : memref<1x64xf32, #tpu.memory_space<vmem>>, vector<1x64xf32>
    %cst_14 = arith.constant dense<0.000000e+00> : vector<1x8xf32>
    %16 = tpu.matmul %15, %14, %cst_14 {dimension_numbers = #tpu.dot_dimension_numbers<[1], [1], [0], [0], [0, 0, 1, 0], [], []>} : vector<1x64xf32>, vector<8x64xf32>, vector<1x8xf32> -> vector<1x8xf32>
    %c0_15 = arith.constant 0 : index
    %c0_16 = arith.constant 0 : index
    %17 = vector.load %arg7[%c0_15, %c0_16] : memref<1x1xf32, #tpu.memory_space<vmem>>, vector<1x1xf32>
    %18 = vector.broadcast %17 : vector<1x1xf32> to vector<1x8xf32>
    %19 = arith.addf %16, %18 : vector<1x8xf32>
    %20 = math.tanh %19 : vector<1x8xf32>
    %c0_17 = arith.constant 0 : index
    %c0_18 = arith.constant 0 : index
    %21 = vector.load %arg8[%c0_17, %c0_18] : memref<1x8xf32, #tpu.memory_space<vmem>>, vector<1x8xf32>
    tpu.vector_store %arg8[%c0_17, %c0_18], %20 {strides = array<i32>} : memref<1x8xf32, #tpu.memory_space<vmem>>, vector<1x8xf32>,
    return
  }
  func.func @transform_0(%arg0: i32) -> (i32, i32) {
    %c0_i32 = arith.constant 0 : i32
    %c0_i32_0 = arith.constant 0 : i32
    return %arg0, %c0_i32 : i32, i32
  }
  func.func @transform_1(%arg0: i32) -> (i32, i32) {
    %c0_i32 = arith.constant 0 : i32
    %c0_i32_0 = arith.constant 0 : i32
    %c0_i32_1 = arith.constant 0 : i32
    return %c0_i32, %c0_i32_0 : i32, i32
  }
  func.func @transform_2(%arg0: i32) -> (i32, i32) {
    %c0_i32 = arith.constant 0 : i32
    %c0_i32_0 = arith.constant 0 : i32
    %c0_i32_1 = arith.constant 0 : i32
    return %c0_i32, %c0_i32_0 : i32, i32
  }
  func.func @transform_3(%arg0: i32) -> (i32, i32) {
    %c0_i32 = arith.constant 0 : i32
    %c0_i32_0 = arith.constant 0 : i32
    %c0_i32_1 = arith.constant 0 : i32
    return %c0_i32, %c0_i32_0 : i32, i32
  }
  func.func @transform_4(%arg0: i32) -> (i32, i32) {
    %c0_i32 = arith.constant 0 : i32
    %c0_i32_0 = arith.constant 0 : i32
    %c0_i32_1 = arith.constant 0 : i32
    return %c0_i32, %c0_i32_0 : i32, i32
  }
  func.func @transform_5(%arg0: i32) -> (i32, i32) {
    %c0_i32 = arith.constant 0 : i32
    %c0_i32_0 = arith.constant 0 : i32
    %c0_i32_1 = arith.constant 0 : i32
    return %c0_i32, %c0_i32_0 : i32, i32
  }
  func.func @transform_6(%arg0: i32) -> (i32, i32) {
    %c0_i32 = arith.constant 0 : i32
    %c0_i32_0 = arith.constant 0 : i32
    %c0_i32_1 = arith.constant 0 : i32
    return %c0_i32, %c0_i32_0 : i32, i32
  }
  func.func @transform_7(%arg0: i32) -> (i32, i32) {
    %c0_i32 = arith.constant 0 : i32
    %c0_i32_0 = arith.constant 0 : i32
    return %c0_i32, %arg0 : i32, i32
  }
}

</mosaic_0001>

<bundles_post_ra>
// kernel: tpu_custom_call.1
= control target key start
LH: loop header
LB: loop body
LE: loop exit
PB: predicated region body
PF: predicated region fallthrough
CT: control target
= control target key end

     0   :  { %s631_s0 = inlined_call_operand.hbm [shape: f32[8,7], index: 0, kind: input, shape index: {}]   ;;  %s632_s1 = inlined_call_operand.hbm [shape: f32[7,64], index: 1, kind: input, shape index: {}]   ;;  %s633_s2 = inlined_call_operand.vmem [shape: f32[1,64], index: 2, kind: input, shape index: {}]   ;;  %s634_s3 = inlined_call_operand.hbm [shape: f32[64,64], index: 3, kind: input, shape index: {}]   ;;  %s635_s4 = inlined_call_operand.vmem [shape: f32[1,64], index: 4, kind: input, shape index: {}]   ;;  %s636_s5 = inlined_call_operand.vmem [shape: f32[1,64], index: 5, kind: input, shape index: {}]   ;;  %s637_s6 = inlined_call_operand.<no memory space> [shape: f32[1,1], index: 6, kind: input, shape index: {}]   ;;  %s638_s7 = inlined_call_operand.hbm [shape: f32[1,8], index: 7, kind: output, shape index: {}]  }
   0x1   :  { %v12_v0 = vstv %s637_s6 }
   0x2   :  { %13 = vst [vmem:[#allocation2] sm:$0x1] %v12_v0 }
   0x3   :  { %14 = vsyncpa [#allocation4], 0 }
   0x4   :  { %15 = vsyncpa [#allocation7], 0 }
   0x5   :  { %16 = vsyncpa [#allocation5], 0  ;;  %s518_s26 = smov [#allocation6]   ;;  %s519_s28 = smov [#allocation3]  }
   0x6   :  { %s33_s27 = sshll.u32 %s518_s26, 4  ;;  %s23_s29 = sshll.u32 %s519_s28, 4  ;;  %s34_s27 = int_to_ptr.vmem [resolvable:$true] %s33_s27  ;;  %s24_s29 = int_to_ptr.vmem [resolvable:$true] %s23_s29 }
   0x7   :  { %s424_s9 = scalar_lea.hbm %s632_s1, 128 }
   0x8   :  { %p425_p0 = scmp.ne.s32.totalorder %s632_s1, %s424_s9  ;;  %p428_p1 = scmp.lt.u32.totalorder %s424_s9, %s632_s1 }
   0xa   :  { %p430_p2 = pnand %p428_p1, %p425_p0 }
   0xc   :  { %433 = shalt.err (!%p430_p2)
}
   0xd   :  { %s434_s13 = scalar_lea.vmem %s34_s27, 128  ;;  %p439_p4 = scmp.lt.s32.totalorder %s34_s27, %s34_s27 }
   0xe   :  { %p435_p3 = scmp.ne.s32.totalorder %s34_s27, %s434_s13  ;;  %p440_p5 = scmp.lt.s32.totalorder %s434_s13, %s434_s13 }
  0x10   :  { %p441_p6 = por %p440_p5, %p439_p4 }
  0x12   :  { %p442_p7 = pnand %p441_p6, %p435_p3 }
  0x14   :  { %445 = shalt.err (!%p442_p7)
}
  0x15   :  { %36 = dma.hbm_to_vmem [thread:$0]  %s632_s1, 128, %s34_s27, [#allocation7]  }
  0x16   :  { %s446_s18 = scalar_lea.hbm %s631_s0, 128 }
  0x17   :  { %p447_p8 = scmp.ne.s32.totalorder %s631_s0, %s446_s18  ;;  %p450_p9 = scmp.lt.u32.totalorder %s446_s18, %s631_s0 }
  0x19   :  { %p452_p10 = pnand %p450_p9, %p447_p8 }
  0x1b   :  { %455 = shalt.err (!%p452_p10)
}
  0x1c   :  { %s456_s23 = scalar_lea.vmem %s24_s29, 128  ;;  %p461_p12 = scmp.lt.s32.totalorder %s24_s29, %s24_s29 }
  0x1d   :  { %p457_p11 = scmp.ne.s32.totalorder %s24_s29, %s456_s23  ;;  %p462_p13 = scmp.lt.s32.totalorder %s456_s23, %s456_s23 }
  0x1f   :  { %p463_p0 = por %p462_p13, %p461_p12 }
  0x21   :  { %p464_p1 = pnand %p463_p0, %p457_p11 }
  0x23   :  { %467 = shalt.err (!%p464_p1)
}
  0x24   :  { %26 = dma.hbm_to_vmem [thread:$0]  %s631_s0, 128, %s24_s29, [#allocation4]  }
  0x25   :  { %s520_s25 = smov [#allocation8]   ;;  %s468_s30 = scalar_lea.hbm %s634_s3, 1024 }
  0x26   :  { %s44_s26 = sshll.u32 %s520_s25, 4  ;;  %p469_p2 = scmp.ne.s32.totalorder %s634_s3, %s468_s30  ;;  %s45_s26 = int_to_ptr.vmem [resolvable:$true] %s44_s26 }
  0x27   :  { %p472_p3 = scmp.lt.u32.totalorder %s468_s30, %s634_s3 }
  0x29   :  { %p474_p4 = pnand %p472_p3, %p469_p2 }
  0x2b   :  { %477 = shalt.err (!%p474_p4)
}
  0x2c   :  { %s478_s12 = scalar_lea.vmem %s45_s26, 1024  ;;  %p483_p6 = scmp.lt.s32.totalorder %s45_s26, %s45_s26 }
  0x2d   :  { %p479_p5 = scmp.ne.s32.totalorder %s45_s26, %s478_s12  ;;  %p484_p7 = scmp.lt.s32.totalorder %s478_s12, %s478_s12 }
  0x2f   :  { %p485_p8 = por %p484_p7, %p483_p6 }
  0x31   :  { %p486_p9 = pnand %p485_p8, %p479_p5 }
  0x33   :  { %489 = shalt.err (!%p486_p9)
}
  0x34   :  { %s521_s0 = smov 128   ;;  %s522_s29 = smov 8  }
  0x35   :  { %50 = dma.hbm_to_vmem [thread:$0]  %s634_s3, 1024, %s45_s26, [#allocation7], %s521_s0, %s521_s0, %s522_s29  }
  0x36   :  { %512 = dma.done.wait [#allocation4], 128  }
  0x37   :  { %513 = vsyncadd [#allocation4], 4294967168 }
  0x38   :  { %514 = dma.done.wait [#allocation7], 1152  }
  0x39   :  { %515 = vsyncadd [#allocation7], 4294966144  ;;  %v523_v1 = vmov 0.0   ;;  %vm524_vm0 = vmmov 0   ;;  %v525_v2 = vmov 0.0|0.0   ;;  %vm79_vm1 = vcmask 1046528  }
  0x3a   :  { %370 = vmatprep.subr.mxu0 %v523_v1  ;;  %372 = vmatprep.mubr.msk.f32.mxu0 %vm524_vm0, %v523_v1  ;;  %vm75_vm2 = vcmask 56320   ;;  %v67_v3 = vld [vmem:[#allocation6] sm:$0x7f]  ;;  %v66_v4 = vld [vmem:[#allocation3] sm:$0xff]  ;;  %v154_v5 = vld [vmem:[#allocation8] sm:$0xff]  ;;  %vm169_vm3 = vcmask 523264   ;;  %v251_v30 = vlaneseq }
  0x3b   :  { %399 = vmatprep.subr.bf16.mxu1 %v525_v2  ;;  %391 = vmatprep.mubr.msk.f32.mxu1 %vm524_vm0, %v523_v1  ;;  %v155_v6 = vld [vmem:[#allocation8 + $0x8] sm:$0xff]  ;;  %v156_v7 = vld [vmem:[#allocation8 + $0x10] sm:$0xff]  ;;  %v157_v8 = vld [vmem:[#allocation8 + $0x18] sm:$0xff]  ;;  %v526_v23 = vmov 0   ;;  %vm332_vm4 = vcmask 57344  }
  0x3c   :  { %371 = vmatpush3.msk.msra.mxu0 %vm79_vm1, %v67_v3  ;;  %v400_v9 = vpack.c.bf16 %v155_v6, %v154_v5  ;;  %v403_v10 = vpack.c.bf16 %v157_v8, %v156_v7  ;;  %v158_v11 = vld [vmem:[#allocation8 + $0x20] sm:$0xff]  ;;  %v159_v12 = vld [vmem:[#allocation8 + $0x28] sm:$0xff]  ;;  %v160_v14 = vld [vmem:[#allocation8 + $0x30] sm:$0xff]  ;;  %421 = vset.pattern.permute.xlu0 %v526_v23  ;;  %v252_v31 = vshrl.u32 %v251_v30, 7 }
  0x3d   :  { %373 = vmatmul.mubr.msk.f32.vlgmr.msra.gmra.mrb[0].mxu0 %vm75_vm2, %v66_v4  ;;  %394 = vmatprep.subr.mxu0 %v523_v1  ;;  %v406_v13 = vpack.c.bf16 %v159_v12, %v158_v11  ;;  %v161_v15 = vld [vmem:[#allocation8 + $0x38] sm:$0xff]  ;;  %v350_v17 = vld [vmem:[%s633_s2] ss:$0 sm:$0xff] }
  0x3e   :  { %396 = vmatprep.mubr.msk.f32.mxu0 %vm524_vm0, %v523_v1  ;;  %401 = vmatpush3.bf16.msra.mxu1 %v400_v9  ;;  %v409_v16 = vpack.c.bf16 %v161_v15, %v160_v14  ;;  %v245_v22 = vld [vmem:[#allocation2] sm:$0x1]  ;;  %v253_v32 = vsub.s32 0, %v252_v31 }
  0x3f   :  { %402 = vmatprep.subr.bf16.mxu1 %v525_v2  ;;  %248 = vperm.xlu0 %421, %v245_v22   ;;  %v353_v24 = vld [vmem:[%s635_s4] ss:$0 sm:$0xff]  ;;  %s527_s4 = smov [#allocation9]  }
  0x40   :  { %v244_v29 = vld [vmem:[%s636_s5] sm:$0x1]  ;;  %s340_s18 = sshll.u32 %s527_s4, 4  ;;  %s341_s18 = int_to_ptr.vmem [resolvable:$true] %s340_s18 }
  0x41   :  { %s490_s19 = scalar_lea.vmem %s341_s18, 16  ;;  %s494_s20 = scalar_lea.vmem %s341_s18, 32 }
  0x42   :  { %404 = vmatpush3.bf16.msra.mxu1 %v403_v10  ;;  %p491_p10 = scmp.ne.s32.totalorder %s341_s18, %s490_s19  ;;  %p495_p11 = scmp.lt.s32.totalorder %s341_s18, %s341_s18 }
  0x43   :  { %405 = vmatprep.subr.bf16.mxu1 %v525_v2  ;;  %p496_p12 = scmp.lt.s32.totalorder %s494_s20, %s490_s19 }
  0x45   :  { %p497_p13 = por %p496_p12, %p495_p11 }
  0x46   :  { %407 = vmatpush3.bf16.msra.mxu1 %v406_v13 }
  0x47   :  { %408 = vmatprep.subr.bf16.mxu1 %v525_v2  ;;  %p498_p0 = pnand %p497_p13, %p491_p10 }
  0x4a   :  { %410 = vmatpush3.bf16.msra.mxu1 %v409_v16 }
  0xbe   :  { %v249_v33 = vpop.permute.xlu0 %248 }
  0xbf   :  { %v254_v34 = vrot.slane %v249_v33, %v253_v32 }
 0x110   :  { %v149_v18 = vpop.f32.mrb[0].mxu0 }
 0x111   :  { %v150_v19 = vadd.f32 %v350_v17, %v149_v18  ;;  %v374_v20 = vpop.f32.mrb[1].mxu0 }
 0x113   :  { %v153_v21 = vmax.f32 %v150_v19, 0.0 }
 0x115   :  { %392 = vmatmul.mubr.msk.f32.vlgmr.msra.gmra.mrb[0].mxu1 %vm169_vm3, %v153_v21 }
 0x1e8   :  { %v239_v25 = vpop.f32.mrb[0].mxu1 }
 0x1e9   :  { %v240_v26 = vadd.f32 %v353_v24, %v239_v25  ;;  %v393_v27 = vpop.f32.mrb[1].mxu1 }
 0x1eb   :  { %v243_v28 = vmax.f32 %v240_v26, 0.0 }
 0x1ed   :  { %395 = vmatpush3.xpose.msk.msra.mxu0 %vm169_vm3, %v243_v28 }
 0x1f0   :  { %397 = vmatmul.mubr.msk.f32.vlgmr.msra.gmra.mrb[2].mxu0 %vm169_vm3, %v244_v29 }
 0x2c3   :  { %v327_v35 = vpop.f32.mrb[2].mxu0 }
 0x2c4   :  { %v328_v36 = vadd.f32 %v327_v35, %v254_v34  ;;  %v398_v37 = vpop.f32.mrb[3].mxu0 }
 0x2c6   :  { %422 = vtanh.f32 %v328_v36 }
 0x2d0   :  { %v423_v38 = vpop.eup %422 }
 0x2d1   :  { %333 = vst.msk [vmem:[#allocation9] sm:$0x1] %vm332_vm4, %v423_v38 }
 0x2d2   :  { %501 = shalt.err (!%p498_p0)
}
 0x2d3   :  { %s502_s22 = scalar_lea.hbm %s638_s7, 16 }
 0x2d4   :  { %p503_p1 = scmp.ne.s32.totalorder %s638_s7, %s502_s22  ;;  %p506_p2 = scmp.lt.u32.totalorder %s502_s22, %s638_s7 }
 0x2d6   :  { %p508_p3 = pnand %p506_p2, %p503_p1 }
 0x2d8   :  { %511 = shalt.err (!%p508_p3)
}
 0x2d9   :  { %343 = dma.vmem_to_hbm [thread:$0]  %s341_s18, 16, %s638_s7, [#allocation5]  }
 0x2da   :  { %516 = dma.done.wait [#allocation5], 16  }
 0x2db   :  { %517 = vsyncadd [#allocation5], 4294967280 }
 0x2dc   :  { %347 = vsyncpa [#allocation4], 1 }
 0x2dd   :  { %348 = vsyncpa [#allocation7], 1 }
 0x2de   :  { %349 = vsyncpa [#allocation5], 1 }

</bundles_post_ra>
